<compile_context>
chip_gen: v5e
topology: v5e:2x2
jax: 0.10.0
libtpu: 0.0.40
codegen_flags: <defaults>
</compile_context>

<pallas_src>
import jax
import jax.numpy as jnp
from jax.experimental import pallas as pl
from jax.experimental.pallas import tpu as pltpu


def _linreg_kernel(x_ref, w_ref, b_ref, o_ref):
    # x_ref: (TILE_M, D) VMEM  -- one batch tile of the input (pipelined)
    # w_ref: (8, D)      VMEM  -- row 0 = weight row, rows 1..7 = zero padding
    # b_ref: (1, 1)      SMEM  -- scalar bias
    # o_ref: (8, TILE_M) VMEM  -- lane-dense result rows (row 0 is y for this tile)
    acc = jax.lax.dot_general(
        w_ref[...], x_ref[...],
        dimension_numbers=(((1,), (1,)), ((), ())),   # contract both last dims: w @ x^T
        preferred_element_type=jnp.float32,
    )                                                  # (8, TILE_M), f32 accumulation
    o_ref[...] = (acc + b_ref[0, 0]).astype(o_ref.dtype)


def _round_up(x, m):
    return (x + m - 1) // m * m


def _vmem_plan():
    """Per-generation plan: (vmem_limit_bytes or None, x-slab byte budget)."""
    try:
        kind = jax.devices()[0].device_kind.lower()
    except Exception:
        kind = ""
    if ("v6" in kind) or ("v5 lite" in kind) or ("v5e" in kind):
        # 128 MiB physical VMEM: raise the scoped limit, use big batch tiles.
        return 96 << 20, 48 << 20
    if "v7" in kind:
        # 64 MiB physical VMEM per TensorCore: keep the double-buffered x slab small.
        return None, 16 << 20
    # Unknown chip: stay inside the default scoped VMEM limit.
    return None, 8 << 20


def linear_regression_forward(x, weight, bias):
    """
    x:      (batch, input_size) float32
    weight: (1, input_size)     float32   (PyTorch nn.Linear layout)
    bias:   (1,)                float32
    returns (batch, 1) float32
    """
    x = jnp.asarray(x, jnp.float32)
    weight = jnp.asarray(weight, jnp.float32)
    bias = jnp.asarray(bias, jnp.float32)
    batch, input_size = x.shape

    # ---- batch tile size from the per-generation VMEM budget ----------------
    vmem_limit, x_budget = _vmem_plan()
    bytes_per_row = input_size * 4
    # 2 buffers (double-buffered pipeline) * TILE_M * row bytes <= budget,
    # TILE_M a multiple of 128 so the output tile stays lane-dense.
    cap = max(128, (x_budget // (2 * bytes_per_row)) // 128 * 128)
    tile_m = int(min(cap, _round_up(batch, 128)))
    grid_m = pl.cdiv(batch, tile_m)          # ragged last tile handled by Pallas
    b_pad = grid_m * tile_m                  # output padded so its tiles divide exactly

    # Weight as a row, padded to a full 8-sublane group (rows 1..7 zero).
    w8 = jnp.zeros((8, input_size), jnp.float32).at[0, :].set(weight.reshape(-1))
    b11 = bias.reshape(1, 1)

    out = pl.pallas_call(
        _linreg_kernel,
        out_shape=jax.ShapeDtypeStruct((8, b_pad), jnp.float32),
        grid_spec=pl.GridSpec(
            grid=(grid_m,),
            in_specs=[
                pl.BlockSpec((tile_m, input_size), lambda i: (i, 0)),   # x tile (streamed)
                pl.BlockSpec((8, input_size), lambda i: (0, 0)),        # weight (resident)
                pl.BlockSpec(memory_space=pltpu.MemorySpace.SMEM),      # scalar bias
            ],
            out_specs=pl.BlockSpec((8, tile_m), lambda i: (0, i)),      # lane-dense output
        ),
        compiler_params=pltpu.CompilerParams(
            dimension_semantics=("parallel",),     # v7x: shard batch tiles over both TCs
            vmem_limit_bytes=vmem_limit,
        ),
    )(x, w8, b11)

    # Row 0 holds the real result; padded batch columns are discarded.
    return out[0, :batch].reshape(batch, 1)


if __name__ == "__main__":
    batch = 8
    input_size = 128

    key = jax.random.PRNGKey(0)
    kx, kw, kb = jax.random.split(key, 3)

    x = jax.random.normal(kx, (batch, input_size), dtype=jnp.float32)
    # Deterministic parameter init (nn.Linear(input_size, 1) shapes).
    weight = jax.random.normal(kw, (1, input_size), dtype=jnp.float32) * 0.1
    bias = jax.random.normal(kb, (1,), dtype=jnp.float32) * 0.1

    y = linear_regression_forward(x, weight, bias)
    y = jax.block_until_ready(y)

    # Reference check against plain JAX (same math as PyTorch nn.Linear).
    y_ref = x @ weight.T + bias
    assert y.shape == (batch, 1)
    assert jnp.allclose(y, y_ref, atol=1e-4, rtol=1e-4), "mismatch vs reference"

    print("KERNEL_OK")
</pallas_src>

<mosaic_0001>
module attributes {stable_mosaic.version = 11 : i64} {
  func.func @_linreg_kernel(%arg0: i32, %arg1: memref<128x128xf32, #tpu.memory_space<vmem>>, %arg2: memref<8x128xf32, #tpu.memory_space<vmem>>, %arg3: memref<1x1xf32, #tpu.memory_space<smem>>, %arg4: memref<8x128xf32, #tpu.memory_space<vmem>>) attributes {dimension_semantics = [#tpu.dimension_semantics<parallel>], iteration_bounds = array<i64: 1>, scalar_prefetch = 0 : i64, scratch_operands = 0 : i64, tpu.core_type = #tpu.core_type<tc>, window_params = [{transform_indices = @transform_0, window_bounds = array<i64: 128, 128>}, {pipeline_mode = #tpu.pipeline_mode<synchronous>, transform_indices = @transform_1, window_bounds = array<i64: 8, 128>}, {transform_indices = @transform_2, window_bounds = array<i64: 1, 1>}, {transform_indices = @transform_3, window_bounds = array<i64: 8, 128>}]} {
    %c0 = arith.constant 0 : index
    %c0_0 = arith.constant 0 : index
    %0 = vector.load %arg2[%c0, %c0_0] : memref<8x128xf32, #tpu.memory_space<vmem>>, vector<8x128xf32>
    %c0_1 = arith.constant 0 : index
    %c0_2 = arith.constant 0 : index
    %1 = vector.load %arg1[%c0_1, %c0_2] : memref<128x128xf32, #tpu.memory_space<vmem>>, vector<128x128xf32>
    %cst = arith.constant dense<0.000000e+00> : vector<8x128xf32>
    %2 = tpu.matmul %0, %1, %cst {dimension_numbers = #tpu.dot_dimension_numbers<[1], [1], [0], [0], [0, 0, 1, 0], [], []>} : vector<8x128xf32>, vector<128x128xf32>, vector<8x128xf32> -> vector<8x128xf32>
    %c0_3 = arith.constant 0 : index
    %c0_4 = arith.constant 0 : index
    %3 = memref.load %arg3[%c0_3, %c0_4] : memref<1x1xf32, #tpu.memory_space<smem>>
    %4 = vector.broadcast %3 : f32 to vector<8x128xf32>
    %5 = arith.addf %2, %4 : vector<8x128xf32>
    %c0_5 = arith.constant 0 : index
    %c0_6 = arith.constant 0 : index
    %6 = vector.load %arg4[%c0_5, %c0_6] : memref<8x128xf32, #tpu.memory_space<vmem>>, vector<8x128xf32>
    tpu.vector_store %arg4[%c0_5, %c0_6], %5 {strides = array<i32>} : memref<8x128xf32, #tpu.memory_space<vmem>>, vector<8x128xf32>,
    return
  }
  func.func @transform_0(%arg0: i32) -> (i32, i32) {
    %c0_i32 = arith.constant 0 : i32
    %c0_i32_0 = arith.constant 0 : i32
    return %arg0, %c0_i32 : i32, i32
  }
  func.func @transform_1(%arg0: i32) -> (i32, i32) {
    %c0_i32 = arith.constant 0 : i32
    %c0_i32_0 = arith.constant 0 : i32
    %c0_i32_1 = arith.constant 0 : i32
    return %c0_i32, %c0_i32_0 : i32, i32
  }
  func.func @transform_2(%arg0: i32) -> (i32, i32) {
    %c0_i32 = arith.constant 0 : i32
    %c0_i32_0 = arith.constant 0 : i32
    %c0_i32_1 = arith.constant 0 : i32
    return %c0_i32, %c0_i32_0 : i32, i32
  }
  func.func @transform_3(%arg0: i32) -> (i32, i32) {
    %c0_i32 = arith.constant 0 : i32
    %c0_i32_0 = arith.constant 0 : i32
    return %c0_i32, %arg0 : i32, i32
  }
}

</mosaic_0001>

<bundles_post_ra>
// kernel: tpu_custom_call.1
= control target key start
LH: loop header
LB: loop body
LE: loop exit
PB: predicated region body
PF: predicated region fallthrough
CT: control target
= control target key end

     0   :  { %9 = vsyncpa [#allocation4], 0  ;;  %s224_s0 = inlined_call_operand.hbm [shape: f32[8,128], index: 0, kind: input, shape index: {}]   ;;  %s225_s1 = inlined_call_operand.hbm [shape: f32[8,128], index: 1, kind: input, shape index: {}]   ;;  %s226_s2 = inlined_call_operand.<no memory space> [shape: f32[1,1], index: 2, kind: input, shape index: {}]   ;;  %s227_s3 = inlined_call_operand.hbm [shape: f32[8,128], index: 3, kind: output, shape index: {}]  }
   0x1   :  { %10 = vsyncpa [#allocation7], 0 }
   0x2   :  { %11 = vsyncpa [#allocation5], 0 }
   0x3   :  { %15 = vsyncadd [#allocation4], 1920  ;;  %s16_s14 = sshll.u32 %s224_s0, 4  ;;  %s187_s15 = smov [#allocation3]   ;;  %s17_s14 = int_to_ptr.hbm [resolvable:$true] %s16_s14 }
   0x4   :  { %s18_s16 = sshll.u32 %s187_s15, 4  ;;  %s30_s19 = sshll.u32 %s225_s1, 4  ;;  %s19_s16 = int_to_ptr.vmem [resolvable:$true] %s18_s16  ;;  %s31_s19 = int_to_ptr.hbm [resolvable:$true] %s30_s19 }
   0x5   :  { %s188_s20 = smov 128   ;;  %s189_s21 = smov 8  }
   0x6   :  { %24 = dma.hbm_to_vmem [thread:$0]  %s17_s14, 128, %s19_s16, [#allocation4], %s188_s20, %s188_s20, %s189_s21  }
   0x7   :  { %s190_s22 = smov [#allocation6]  }
   0x8   :  { %s32_s23 = sshll.u32 %s190_s22, 4  ;;  %s33_s23 = int_to_ptr.vmem [resolvable:$true] %s32_s23 }
   0x9   :  { %35 = dma.hbm_to_vmem [thread:$0]  %s31_s19, 128, %s33_s23, [#allocation7]  }
   0xa   :  { %181 = dma.done.wait [#allocation4], 2048  }
   0xb   :  { %182 = vsyncadd [#allocation4], 4294965248 }
   0xc   :  { %183 = dma.done.wait [#allocation7], 128  }
   0xd   :  { %184 = vsyncadd [#allocation7], 4294967168  ;;  %v62_v0 = vld [vmem:[#allocation3 + $0x78] sm:$0xff]  ;;  %v61_v1 = vld [vmem:[#allocation3 + $0x70] sm:$0xff]  ;;  %v64_v17 = vstv %s226_s2  ;;  %s191_s24 = smov [#allocation8]   ;;  %s93_s28 = sshll.u32 %s227_s3, 4  ;;  %s94_s28 = int_to_ptr.hbm [resolvable:$true] %s93_s28 }
   0xe   :  { %65 = vmatpush.xpose.msra.mxu0 %v62_v0  ;;  %v60_v2 = vld [vmem:[#allocation3 + $0x68] sm:$0xff]  ;;  %v59_v3 = vld [vmem:[#allocation3 + $0x60] sm:$0xff]  ;;  %v58_v4 = vld [vmem:[#allocation3 + $0x58] sm:$0xff]  ;;  %s91_s25 = sshll.u32 %s191_s24, 4  ;;  %s92_s25 = int_to_ptr.vmem [resolvable:$true] %s91_s25 }
   0xf   :  { %v57_v5 = vld [vmem:[#allocation3 + $0x50] sm:$0xff]  ;;  %v56_v6 = vld [vmem:[#allocation3 + $0x48] sm:$0xff]  ;;  %v55_v7 = vld [vmem:[#allocation3 + $0x40] sm:$0xff] }
  0x10   :  { %v54_v8 = vld [vmem:[#allocation3 + $0x38] sm:$0xff]  ;;  %v53_v9 = vld [vmem:[#allocation3 + $0x30] sm:$0xff]  ;;  %v52_v10 = vld [vmem:[#allocation3 + $0x28] sm:$0xff] }
  0x11   :  { %v51_v11 = vld [vmem:[#allocation3 + $0x20] sm:$0xff]  ;;  %v50_v12 = vld [vmem:[#allocation3 + $0x18] sm:$0xff]  ;;  %v49_v13 = vld [vmem:[#allocation3 + $0x10] sm:$0xff] }
  0x12   :  { %66 = vmatpush.xpose.msra.mxu0 %v61_v1  ;;  %v48_v14 = vld [vmem:[#allocation3 + $0x8] sm:$0xff]  ;;  %v47_v15 = vld [vmem:[#allocation3] sm:$0xff] }
  0x13   :  { %v46_v16 = vld [vmem:[#allocation6] sm:$0xff] }
  0x16   :  { %67 = vmatpush.xpose.msra.mxu0 %v60_v2 }
  0x1a   :  { %68 = vmatpush.xpose.msra.mxu0 %v59_v3 }
  0x1e   :  { %69 = vmatpush.xpose.msra.mxu0 %v58_v4 }
  0x22   :  { %70 = vmatpush.xpose.msra.mxu0 %v57_v5 }
  0x26   :  { %71 = vmatpush.xpose.msra.mxu0 %v56_v6 }
  0x2a   :  { %72 = vmatpush.xpose.msra.mxu0 %v55_v7 }
  0x2e   :  { %73 = vmatpush.xpose.msra.mxu0 %v54_v8 }
  0x32   :  { %74 = vmatpush.xpose.msra.mxu0 %v53_v9 }
  0x36   :  { %75 = vmatpush.xpose.msra.mxu0 %v52_v10 }
  0x3a   :  { %76 = vmatpush.xpose.msra.mxu0 %v51_v11 }
  0x3e   :  { %77 = vmatpush.xpose.msra.mxu0 %v50_v12 }
  0x42   :  { %78 = vmatpush.xpose.msra.mxu0 %v49_v13 }
  0x46   :  { %79 = vmatpush.xpose.msra.mxu0 %v48_v14 }
  0x4a   :  { %80 = vmatpush.xpose.msra.mxu0 %v47_v15 }
  0x4d   :  { %81 = vmatmul.f32.vlgmr.msra.gmra.mxu0 %v46_v16 }
  0xca   :  { %v82_v18 = vpop.f32.mrf.mxu0 }
  0xcb   :  { %v83_v19 = vadd.f32 %v82_v18, %v64_v17 }
  0xcd   :  { %85 = vst [vmem:[#allocation8] sm:$0xff] %v83_v19 }
  0xce   :  { %96 = dma.vmem_to_hbm [thread:$0]  %s92_s25, 128, %s94_s28, [#allocation5]  }
  0xcf   :  { %185 = dma.done.wait [#allocation5], 128  }
  0xd0   :  { %186 = vsyncadd [#allocation5], 4294967168 }
  0xd1   :  { %101 = vsyncpa [#allocation4], 1 }
  0xd2   :  { %102 = vsyncpa [#allocation7], 1 }
  0xd3   :  { %103 = vsyncpa [#allocation5], 1 }

</bundles_post_ra>
